<compile_context>
chip_gen: v7x
topology: tpu7x:2x2x1
jax: 0.10.0
libtpu: 0.0.40
codegen_flags: <defaults>
</compile_context>

<pallas_src>
import math

import jax
import jax.numpy as jnp
from jax import lax
from jax.experimental import pallas as pl
from jax.experimental.pallas import tpu as pltpu

KERNEL_SET = (3, 5, 7)
N_TAPS = KERNEL_SET[-1]  # 7


def _split_cout(cout):
    base = math.floor(cout / len(KERNEL_SET))
    first = base + cout % len(KERNEL_SET)
    return (first, base, base)


def _round_up(x, m):
    return ((x + m - 1) // m) * m


def _vmem_capacity_bytes():
    try:
        return int(pltpu.get_tpu_info().vmem_capacity_bytes)
    except Exception:
        return 128 * 1024 * 1024  # v5e/v6e default; v7x has 64 MiB


def _fuse_params(weights, biases, cin, cout_p, compute_dtype):
    """Per-tap fused weights (7, cout_p, cin) + bias (cout_p, 1) f32.

    Tap m corresponds to input offset (m-3)*dilation relative to the output
    position.  The branch with kernel k occupies taps m = (7-k)//2 .. (7-k)//2+k-1;
    all other taps (and the cout -> cout_p row padding) are zero.
    """
    w_taps = jnp.zeros((N_TAPS, cout_p, cin), dtype=jnp.float32)
    b_fused = jnp.zeros((cout_p, 1), dtype=jnp.float32)
    row = 0
    for w, b, kern in zip(weights, biases, KERNEL_SET):
        ck = int(w.shape[0])
        off = (N_TAPS - kern) // 2
        # PyTorch Conv1d weight (ck, cin, kern) -> tap-major (kern, ck, cin)
        w_taps = w_taps.at[off:off + kern, row:row + ck, :].set(
            jnp.transpose(w.astype(jnp.float32), (2, 0, 1)))
        b_fused = b_fused.at[row:row + ck, 0].set(b.reshape(-1).astype(jnp.float32))
        row += ck
    return w_taps.astype(compute_dtype), b_fused


def _make_kernel(b_tile, t_tile, cin, cout_p, dilation):
    def kernel(xa_ref, xb_ref, w_ref, b_ref, o_ref):
        # Weights / bias: constant index maps -> DMA'd once, VMEM-resident.
        w = w_ref[...]                                   # (7, cout_p, cin), compute dtype
        bias = b_ref[...]                                # (cout_p, 1), f32
        # Halo'd time window: main block + narrow (128-wide) halo block.
        x_blk = jnp.concatenate([xa_ref[...], xb_ref[...]], axis=2)   # (b_tile, cin, t_tile+h)
        # f32 accumulator, initialized with the bias (broadcast hoisted, done once).
        acc = jnp.broadcast_to(bias[None, :, :],
                               (b_tile, cout_p, t_tile)).astype(jnp.float32)
        # 7 per-tap batched MXU dots (M=cout_p, K=cin, N=t_tile, batch=b_tile).
        # Tap windows are static lane shifts of x_blk -> no im2col materialization,
        # no per-row vector-store traffic.
        for m in range(N_TAPS):
            x_m = x_blk[:, :, m * dilation: m * dilation + t_tile]    # (b_tile, cin, t_tile)
            w_m = jnp.broadcast_to(w[m], (b_tile, cout_p, cin))
            acc = acc + lax.dot_general(
                w_m, x_m,
                dimension_numbers=(((2,), (1,)), ((0,), (0,))),
                preferred_element_type=jnp.float32)
        # Lane-dense, full-channel (cout_p multiple of 8) store; T on lanes.
        o_ref[...] = acc.astype(o_ref.dtype)
    return kernel


def dilated_inception_pallas(x, weights, biases, dilation=1, *,
                             b_tile=None, t_tile=None,
                             compute_dtype=jnp.bfloat16):
    """x: (B, Cin, T) (PyTorch NCL). Returns (B, Cout, T) float32."""
    B, cin, T = x.shape
    cout = sum(int(w.shape[0]) for w in weights)
    cout_p = _round_up(cout, 8)                 # dense sublanes / unmasked stores
    pad_max = dilation * (N_TAPS - 1) // 2      # 3*dilation ("same" pad of widest kernel)

    # Halo block: smallest 128-multiple covering all 7 dilated taps past the tile edge.
    h_tile = _round_up(max(128, 2 * pad_max), 128)

    vmem_cap = _vmem_capacity_bytes()
    big_vmem = vmem_cap >= 96 * 1024 * 1024     # v5e / v6e (128 MiB); v7x has 64 MiB

    # ---- tile sizing (lane-dense, generation-aware) ----
    if t_tile is None:
        t_tile = min(1024 if big_vmem else 512, _round_up(T, 128))
    t_tile = _round_up(max(t_tile, h_tile), h_tile)   # halo index map needs t_tile % h_tile == 0
    if b_tile is None:
        b_tile = min(B, 16 if big_vmem else 8)
    # Expose >=2 grid steps when possible so dual-TC chips (v7x) use both cores.
    if pl.cdiv(B, b_tile) == 1:
        while (pl.cdiv(T, t_tile) < 2 and t_tile >= 2 * h_tile
               and (t_tile // 2) % h_tile == 0 and T > t_tile // 2):
            t_tile //= 2

    num_b = pl.cdiv(B, b_tile)
    num_t = pl.cdiv(T, t_tile)
    b_pad = num_b * b_tile
    t_total = num_t * t_tile + h_tile           # only +h_tile (128) for the halo fetch
    t_mult = t_tile // h_tile

    # ---- input prep: stay NCL (no HBM transposes); cast once to compute dtype ----
    if x.dtype != compute_dtype:
        x = x.astype(compute_dtype)
    x_pad = jnp.pad(x, ((0, b_pad - B), (0, 0), (pad_max, t_total - T - pad_max)))

    w_taps, b_fused = _fuse_params(weights, biases, cin, cout_p, compute_dtype)

    kernel = _make_kernel(b_tile, t_tile, cin, cout_p, dilation)

    # ---- VMEM budget / cost hints ----
    isz = jnp.dtype(compute_dtype).itemsize
    xa_b = isz * b_tile * cin * t_tile
    xb_b = isz * b_tile * cin * h_tile
    out_b = 4 * b_tile * cout_p * t_tile
    w_b = isz * N_TAPS * cout_p * cin + 4 * cout_p
    scratch_b = isz * b_tile * cin * (t_tile + h_tile) + 4 * b_tile * cout_p * t_tile
    vmem_need = 2 * (xa_b + xb_b + out_b) + w_b + 2 * scratch_b
    vmem_limit = int(min(int(0.6 * vmem_cap), max(16 * 1024 * 1024, 2 * vmem_need)))

    cost = pl.CostEstimate(
        flops=2 * b_pad * num_t * t_tile * cout_p * N_TAPS * cin,
        transcendentals=0,
        bytes_accessed=(isz * b_pad * cin * num_t * (t_tile + h_tile)   # input + narrow halo
                        + 4 * b_pad * cout_p * num_t * t_tile           # output
                        + w_b),
    )

    out = pl.pallas_call(
        kernel,
        out_shape=jax.ShapeDtypeStruct((b_pad, cout_p, num_t * t_tile), jnp.float32),
        grid=(num_b, num_t),
        in_specs=[
            # Main time block t ...
            pl.BlockSpec((b_tile, cin, t_tile), lambda b, t: (b, 0, t)),
            # ... plus a narrow h_tile-wide halo block starting right after it.
            pl.BlockSpec((b_tile, cin, h_tile), lambda b, t: (b, 0, (t + 1) * t_mult)),
            # Per-tap fused weights / bias: constant index map -> fetched once, resident.
            pl.BlockSpec((N_TAPS, cout_p, cin), lambda b, t: (0, 0, 0)),
            pl.BlockSpec((cout_p, 1), lambda b, t: (0, 0)),
        ],
        out_specs=pl.BlockSpec((b_tile, cout_p, t_tile), lambda b, t: (b, 0, t)),
        compiler_params=pltpu.CompilerParams(
            dimension_semantics=("parallel", "parallel"),
            vmem_limit_bytes=vmem_limit,
        ),
        cost_estimate=cost,
    )(x_pad, x_pad, w_taps, b_fused)

    return out[:B, :cout, :T]


def _reference(x, weights, biases, dilation=1):
    outs = []
    for w, b, kern in zip(weights, biases, KERNEL_SET):
        pad = dilation * (kern - 1) // 2
        y = lax.conv_general_dilated(
            x, w,
            window_strides=(1,),
            padding=[(pad, pad)],
            rhs_dilation=(dilation,),
            dimension_numbers=("NCH", "OIH", "NCH"),
        )
        outs.append(y + b[None, :, None])
    return jnp.concatenate(outs, axis=1)


def _run_case(B, cin, cout, T, dilation):
    couts = _split_cout(cout)
    key = jax.random.PRNGKey(0)
    keys = jax.random.split(key, 1 + 2 * len(KERNEL_SET))
    x = jax.random.normal(keys[0], (B, cin, T), dtype=jnp.float32)

    weights, biases = [], []
    for i, (kern, ck) in enumerate(zip(KERNEL_SET, couts)):
        bound = 1.0 / math.sqrt(cin * kern)  # deterministic, PyTorch-like scale
        weights.append(jax.random.uniform(keys[1 + 2 * i], (ck, cin, kern),
                                          minval=-bound, maxval=bound, dtype=jnp.float32))
        biases.append(jax.random.uniform(keys[2 + 2 * i], (ck,),
                                         minval=-bound, maxval=bound, dtype=jnp.float32))

    y_ref = _reference(x, weights, biases, dilation)

    # Exact f32 compute path: tight check against the conv reference.
    y32 = jax.block_until_ready(dilated_inception_pallas(
        x, weights, biases, dilation, compute_dtype=jnp.float32))
    assert y32.shape == (B, cout, T), y32.shape
    assert jnp.allclose(y32, y_ref, atol=1e-5, rtol=1e-5), \
        f"f32 path mismatch (B={B}, cin={cin}, cout={cout}, T={T}, d={dilation})"

    # Default fast bf16 compute path (f32 accumulation): loose tolerance.
    ybf = jax.block_until_ready(dilated_inception_pallas(x, weights, biases, dilation))
    assert ybf.shape == (B, cout, T), ybf.shape
    assert jnp.allclose(ybf, y_ref, atol=5e-2, rtol=5e-2), \
        f"bf16 path mismatch (B={B}, cin={cin}, cout={cout}, T={T}, d={dilation})"


if __name__ == "__main__":
    # Main small config (batch=2, cin=4, cout=6, window=16, dilation=1).
    _run_case(2, 4, 6, 16, 1)
    # Extra coverage: dilation=2, cout not a multiple of 8, batch/channel padding paths.
    _run_case(3, 8, 9, 24, 2)
    print("KERNEL_OK")
</pallas_src>

<mosaic_0001>
module attributes {stable_mosaic.version = 11 : i64} {
  func.func @kernel(%arg0: i32, %arg1: i32, %arg2: memref<2x4x128xf32, #tpu.memory_space<vmem>>, %arg3: memref<2x4x128xf32, #tpu.memory_space<vmem>>, %arg4: memref<7x8x4xf32, #tpu.memory_space<vmem>>, %arg5: memref<8x1xf32, #tpu.memory_space<vmem>>, %arg6: memref<2x8x128xf32, #tpu.memory_space<vmem>>) attributes {dimension_semantics = [#tpu.dimension_semantics<parallel>, #tpu.dimension_semantics<parallel>], iteration_bounds = array<i64: 1, 1>, scalar_prefetch = 0 : i64, scratch_operands = 0 : i64, tpu.core_type = #tpu.core_type<tc>, window_params = [{transform_indices = @transform_0, window_bounds = array<i64: 2, 4, 128>}, {transform_indices = @transform_1, window_bounds = array<i64: 2, 4, 128>}, {pipeline_mode = #tpu.pipeline_mode<synchronous>, transform_indices = @transform_2, window_bounds = array<i64: 7, 8, 4>}, {pipeline_mode = #tpu.pipeline_mode<synchronous>, transform_indices = @transform_3, window_bounds = array<i64: 8, 1>}, {transform_indices = @transform_4, window_bounds = array<i64: 2, 8, 128>}]} {
    %c0 = arith.constant 0 : index
    %c0_0 = arith.constant 0 : index
    %c0_1 = arith.constant 0 : index
    %0 = vector.load %arg4[%c0, %c0_0, %c0_1] : memref<7x8x4xf32, #tpu.memory_space<vmem>>, vector<7x8x4xf32>
    %c0_2 = arith.constant 0 : index
    %c0_3 = arith.constant 0 : index
    %1 = vector.load %arg5[%c0_2, %c0_3] : memref<8x1xf32, #tpu.memory_space<vmem>>, vector<8x1xf32>
    %c0_4 = arith.constant 0 : index
    %c0_5 = arith.constant 0 : index
    %c0_6 = arith.constant 0 : index
    %2 = vector.load %arg2[%c0_4, %c0_5, %c0_6] : memref<2x4x128xf32, #tpu.memory_space<vmem>>, vector<2x4x128xf32>
    %c0_7 = arith.constant 0 : index
    %c0_8 = arith.constant 0 : index
    %c0_9 = arith.constant 0 : index
    %3 = vector.load %arg3[%c0_7, %c0_8, %c0_9] : memref<2x4x128xf32, #tpu.memory_space<vmem>>, vector<2x4x128xf32>
    %4 = tpu.concatenate %2, %3 in 2 : vector<2x4x128xf32>, vector<2x4x128xf32> -> vector<2x4x256xf32>
    %5 = vector.shape_cast %1 : vector<8x1xf32> to vector<1x8x1xf32>
    %6 = vector.shape_cast %5 : vector<1x8x1xf32> to vector<1x8x1xf32>
    %7 = vector.broadcast %6 : vector<1x8x1xf32> to vector<2x8x128xf32>
    %8 = vector.extract_strided_slice %4 {offsets = [0, 0, 0], sizes = [2, 4, 128], strides = [1, 1, 1]} : vector<2x4x256xf32> to vector<2x4x128xf32>
    %9 = vector.extract_strided_slice %0 {offsets = [0, 0, 0], sizes = [1, 8, 4], strides = [1, 1, 1]} : vector<7x8x4xf32> to vector<1x8x4xf32>
    %10 = vector.shape_cast %9 : vector<1x8x4xf32> to vector<8x4xf32>
    %11 = vector.shape_cast %10 : vector<8x4xf32> to vector<1x8x4xf32>
    %12 = vector.broadcast %11 : vector<1x8x4xf32> to vector<2x8x4xf32>
    %cst = arith.constant dense<0.000000e+00> : vector<2x8x128xf32>
    %13 = tpu.matmul %12, %8, %cst {dimension_numbers = #tpu.dot_dimension_numbers<[2], [1], [1], [2], [0, 0, 0, 1, 1, 2], [0], [0]>} : vector<2x8x4xf32>, vector<2x4x128xf32>, vector<2x8x128xf32> -> vector<2x8x128xf32>
    %14 = arith.addf %7, %13 : vector<2x8x128xf32>
    %15 = vector.extract_strided_slice %4 {offsets = [0, 0, 1], sizes = [2, 4, 128], strides = [1, 1, 1]} : vector<2x4x256xf32> to vector<2x4x128xf32>
    %16 = vector.extract_strided_slice %0 {offsets = [1, 0, 0], sizes = [1, 8, 4], strides = [1, 1, 1]} : vector<7x8x4xf32> to vector<1x8x4xf32>
    %17 = vector.shape_cast %16 : vector<1x8x4xf32> to vector<8x4xf32>
    %18 = vector.shape_cast %17 : vector<8x4xf32> to vector<1x8x4xf32>
    %19 = vector.broadcast %18 : vector<1x8x4xf32> to vector<2x8x4xf32>
    %cst_10 = arith.constant dense<0.000000e+00> : vector<2x8x128xf32>
    %20 = tpu.matmul %19, %15, %cst_10 {dimension_numbers = #tpu.dot_dimension_numbers<[2], [1], [1], [2], [0, 0, 0, 1, 1, 2], [0], [0]>} : vector<2x8x4xf32>, vector<2x4x128xf32>, vector<2x8x128xf32> -> vector<2x8x128xf32>
    %21 = arith.addf %14, %20 : vector<2x8x128xf32>
    %22 = vector.extract_strided_slice %4 {offsets = [0, 0, 2], sizes = [2, 4, 128], strides = [1, 1, 1]} : vector<2x4x256xf32> to vector<2x4x128xf32>
    %23 = vector.extract_strided_slice %0 {offsets = [2, 0, 0], sizes = [1, 8, 4], strides = [1, 1, 1]} : vector<7x8x4xf32> to vector<1x8x4xf32>
    %24 = vector.shape_cast %23 : vector<1x8x4xf32> to vector<8x4xf32>
    %25 = vector.shape_cast %24 : vector<8x4xf32> to vector<1x8x4xf32>
    %26 = vector.broadcast %25 : vector<1x8x4xf32> to vector<2x8x4xf32>
    %cst_11 = arith.constant dense<0.000000e+00> : vector<2x8x128xf32>
    %27 = tpu.matmul %26, %22, %cst_11 {dimension_numbers = #tpu.dot_dimension_numbers<[2], [1], [1], [2], [0, 0, 0, 1, 1, 2], [0], [0]>} : vector<2x8x4xf32>, vector<2x4x128xf32>, vector<2x8x128xf32> -> vector<2x8x128xf32>
    %28 = arith.addf %21, %27 : vector<2x8x128xf32>
    %29 = vector.extract_strided_slice %4 {offsets = [0, 0, 3], sizes = [2, 4, 128], strides = [1, 1, 1]} : vector<2x4x256xf32> to vector<2x4x128xf32>
    %30 = vector.extract_strided_slice %0 {offsets = [3, 0, 0], sizes = [1, 8, 4], strides = [1, 1, 1]} : vector<7x8x4xf32> to vector<1x8x4xf32>
    %31 = vector.shape_cast %30 : vector<1x8x4xf32> to vector<8x4xf32>
    %32 = vector.shape_cast %31 : vector<8x4xf32> to vector<1x8x4xf32>
    %33 = vector.broadcast %32 : vector<1x8x4xf32> to vector<2x8x4xf32>
    %cst_12 = arith.constant dense<0.000000e+00> : vector<2x8x128xf32>
    %34 = tpu.matmul %33, %29, %cst_12 {dimension_numbers = #tpu.dot_dimension_numbers<[2], [1], [1], [2], [0, 0, 0, 1, 1, 2], [0], [0]>} : vector<2x8x4xf32>, vector<2x4x128xf32>, vector<2x8x128xf32> -> vector<2x8x128xf32>
    %35 = arith.addf %28, %34 : vector<2x8x128xf32>
    %36 = vector.extract_strided_slice %4 {offsets = [0, 0, 4], sizes = [2, 4, 128], strides = [1, 1, 1]} : vector<2x4x256xf32> to vector<2x4x128xf32>
    %37 = vector.extract_strided_slice %0 {offsets = [4, 0, 0], sizes = [1, 8, 4], strides = [1, 1, 1]} : vector<7x8x4xf32> to vector<1x8x4xf32>
    %38 = vector.shape_cast %37 : vector<1x8x4xf32> to vector<8x4xf32>
    %39 = vector.shape_cast %38 : vector<8x4xf32> to vector<1x8x4xf32>
    %40 = vector.broadcast %39 : vector<1x8x4xf32> to vector<2x8x4xf32>
    %cst_13 = arith.constant dense<0.000000e+00> : vector<2x8x128xf32>
    %41 = tpu.matmul %40, %36, %cst_13 {dimension_numbers = #tpu.dot_dimension_numbers<[2], [1], [1], [2], [0, 0, 0, 1, 1, 2], [0], [0]>} : vector<2x8x4xf32>, vector<2x4x128xf32>, vector<2x8x128xf32> -> vector<2x8x128xf32>
    %42 = arith.addf %35, %41 : vector<2x8x128xf32>
    %43 = vector.extract_strided_slice %4 {offsets = [0, 0, 5], sizes = [2, 4, 128], strides = [1, 1, 1]} : vector<2x4x256xf32> to vector<2x4x128xf32>
    %44 = vector.extract_strided_slice %0 {offsets = [5, 0, 0], sizes = [1, 8, 4], strides = [1, 1, 1]} : vector<7x8x4xf32> to vector<1x8x4xf32>
    %45 = vector.shape_cast %44 : vector<1x8x4xf32> to vector<8x4xf32>
    %46 = vector.shape_cast %45 : vector<8x4xf32> to vector<1x8x4xf32>
    %47 = vector.broadcast %46 : vector<1x8x4xf32> to vector<2x8x4xf32>
    %cst_14 = arith.constant dense<0.000000e+00> : vector<2x8x128xf32>
    %48 = tpu.matmul %47, %43, %cst_14 {dimension_numbers = #tpu.dot_dimension_numbers<[2], [1], [1], [2], [0, 0, 0, 1, 1, 2], [0], [0]>} : vector<2x8x4xf32>, vector<2x4x128xf32>, vector<2x8x128xf32> -> vector<2x8x128xf32>
    %49 = arith.addf %42, %48 : vector<2x8x128xf32>
    %50 = vector.extract_strided_slice %4 {offsets = [0, 0, 6], sizes = [2, 4, 128], strides = [1, 1, 1]} : vector<2x4x256xf32> to vector<2x4x128xf32>
    %51 = vector.extract_strided_slice %0 {offsets = [6, 0, 0], sizes = [1, 8, 4], strides = [1, 1, 1]} : vector<7x8x4xf32> to vector<1x8x4xf32>
    %52 = vector.shape_cast %51 : vector<1x8x4xf32> to vector<8x4xf32>
    %53 = vector.shape_cast %52 : vector<8x4xf32> to vector<1x8x4xf32>
    %54 = vector.broadcast %53 : vector<1x8x4xf32> to vector<2x8x4xf32>
    %cst_15 = arith.constant dense<0.000000e+00> : vector<2x8x128xf32>
    %55 = tpu.matmul %54, %50, %cst_15 {dimension_numbers = #tpu.dot_dimension_numbers<[2], [1], [1], [2], [0, 0, 0, 1, 1, 2], [0], [0]>} : vector<2x8x4xf32>, vector<2x4x128xf32>, vector<2x8x128xf32> -> vector<2x8x128xf32>
    %56 = arith.addf %49, %55 : vector<2x8x128xf32>
    %c0_16 = arith.constant 0 : index
    %c0_17 = arith.constant 0 : index
    %c0_18 = arith.constant 0 : index
    %57 = vector.load %arg6[%c0_16, %c0_17, %c0_18] : memref<2x8x128xf32, #tpu.memory_space<vmem>>, vector<2x8x128xf32>
    tpu.vector_store %arg6[%c0_16, %c0_17, %c0_18], %56 {strides = array<i32>} : memref<2x8x128xf32, #tpu.memory_space<vmem>>, vector<2x8x128xf32>,
    return
  }
  func.func @transform_0(%arg0: i32, %arg1: i32) -> (i32, i32, i32) {
    %c0_i32 = arith.constant 0 : i32
    %c0_i32_0 = arith.constant 0 : i32
    return %arg0, %c0_i32, %arg1 : i32, i32, i32
  }
  func.func @transform_1(%arg0: i32, %arg1: i32) -> (i32, i32, i32) {
    %c1_i32 = arith.constant 1 : i32
    %0 = arith.addi %arg1, %c1_i32 : i32
    %c1_i32_0 = arith.constant 1 : i32
    %1 = arith.muli %0, %c1_i32_0 : i32
    %c0_i32 = arith.constant 0 : i32
    %c0_i32_1 = arith.constant 0 : i32
    return %arg0, %c0_i32, %1 : i32, i32, i32
  }
  func.func @transform_2(%arg0: i32, %arg1: i32) -> (i32, i32, i32) {
    %c0_i32 = arith.constant 0 : i32
    %c0_i32_0 = arith.constant 0 : i32
    %c0_i32_1 = arith.constant 0 : i32
    %c0_i32_2 = arith.constant 0 : i32
    return %c0_i32, %c0_i32_0, %c0_i32_1 : i32, i32, i32
  }
  func.func @transform_3(%arg0: i32, %arg1: i32) -> (i32, i32) {
    %c0_i32 = arith.constant 0 : i32
    %c0_i32_0 = arith.constant 0 : i32
    %c0_i32_1 = arith.constant 0 : i32
    return %c0_i32, %c0_i32_0 : i32, i32
  }
  func.func @transform_4(%arg0: i32, %arg1: i32) -> (i32, i32, i32) {
    %c0_i32 = arith.constant 0 : i32
    %c0_i32_0 = arith.constant 0 : i32
    return %arg0, %c0_i32, %arg1 : i32, i32, i32
  }
}

</mosaic_0001>

<bundles_post_ra>
// kernel: tpu_custom_call.1
= control target key start
LH: loop header
LB: loop body
LE: loop exit
PB: predicated region body
PF: predicated region fallthrough
CT: control target
= control target key end

     0   :  { %v1462_v4 = vmov 0.0   ;;  %s1617_s0 = inlined_call_operand.vmem [shape: f32[2,4,256], index: 0, kind: input, shape index: {}]   ;;  %s1618_s1 = inlined_call_operand.vmem [shape: f32[2,4,256], index: 1, kind: input, shape index: {}]   ;;  %s1619_s2 = inlined_call_operand.vmem [shape: f32[7,8,4], index: 2, kind: input, shape index: {}]   ;;  %s1620_s3 = inlined_call_operand.vmem [shape: f32[8,1], index: 3, kind: input, shape index: {}]   ;;  %s1621_s4 = inlined_call_operand.hbm [shape: f32[2,8,128], index: 4, kind: output, shape index: {}]  }
   0x1   :  { %v29_v0 = vld [vmem:[%s1617_s0 + $0x8] sm:$0xf]  ;;  %v27_v1 = vld [vmem:[%s1617_s0] sm:$0xf]  ;;  %v1272_v2 = vld [vmem:[%s1618_s1 + $0xc] sm:$0xf]  ;;  %1329 = vmatprep.subr.mxu0 %v1462_v4  ;;  %1334 = vmatprep.subr.mxu1 %v1462_v4 }
   0x2   :  { %30 = vst [vmem:[#allocation2 + $0x4] sm:$0xf] %v29_v0  ;;  %28 = vst [vmem:[#allocation2] sm:$0xf] %v27_v1  ;;  %v1271_v3 = vld [vmem:[%s1618_s1 + $0x4] sm:$0xf] }
   0x3   :  { %78 = vst [vmem:[#allocation3 + $0x4] sm:$0xf] %v1272_v2  ;;  %76 = vst [vmem:[#allocation3] sm:$0xf] %v1271_v3 }
   0x4   :  { %9 = vsyncpa [#allocation5], 0  ;;  %vm1463_vm0 = vmmov 0   ;;  %vm133_vm1 = vcmask 1043456   ;;  %v112_v7 = vld [vmem:[%s1619_s2] sm:$0xff]  ;;  %vm129_vm2 = vcmask 31744  }
   0x5   :  { %1331 = vmatprep.mubr.msk.f32.mxu0 %vm1463_vm0, %v1462_v4  ;;  %1336 = vmatprep.mubr.msk.f32.mxu1 %vm1463_vm0, %v1462_v4  ;;  %s1464_s23 = smov 127   ;;  %s1465_s24 = smov 126   ;;  %v1469_v10 = vmov 0   ;;  %v119_v11 = vld [vmem:[%s1620_s3] sm:$0xff]  ;;  %vm287_vm3 = vcmask 1039360   ;;  %v113_v16 = vld [vmem:[%s1619_s2 + $0x8] sm:$0xff] }
   0x6   :  { %s1466_s25 = smov 125   ;;  %s1467_s26 = smov 124   ;;  %1437 = vset.pattern.permute.xlu0 %v1469_v10  ;;  %vm448_vm4 = vcmask 1031168   ;;  %v114_v24 = vld [vmem:[%s1619_s2 + $0x10] sm:$0xff]  ;;  %vm608_vm5 = vcmask 1022976   ;;  %v115_v31 = vld [vmem:[%s1619_s2 + $0x18] sm:$0xff] }
   0x7   :  { %s1468_s27 = smov 123   ;;  %s1470_s28 = smov 122   ;;  %vm768_vm6 = vcmask 1014784   ;;  %v116_v38 = vld [vmem:[%s1619_s2 + $0x20] sm:$0xff]  ;;  %vm928_vm7 = vcmask 1006592   ;;  %v117_v45 = vld [vmem:[%s1619_s2 + $0x28] sm:$0xff] }
   0x8   :  { %vm1088_vm8 = vcmask 998400   ;;  %v118_v52 = vld [vmem:[%s1619_s2 + $0x30] sm:$0xff]  ;;  %s1471_s16 = smov [#allocation4]  }
   0x9   :  { %v121_v5 = vld [vmem:[#allocation2 + $0x4] sm:$0xf]  ;;  %v120_v6 = vld [vmem:[#allocation2] sm:$0xf]  ;;  %s1251_s17 = sshll.u32 %s1471_s16, 4  ;;  %s1252_s17 = int_to_ptr.vmem [resolvable:$true] %s1251_s17 }
   0xa   :  { %365 = vrot.lane.b32.xlu1 %v121_v5, %s1464_s23  ;;  %283 = vrot.lane.b32.xlu0 %v120_v6, %s1464_s23  ;;  %v123_v8 = vld [vmem:[#allocation3 + $0x4] sm:$0xf]  ;;  %v122_v9 = vld [vmem:[#allocation3] sm:$0xf]  ;;  %s1438_s2 = scalar_lea.vmem %s1252_s17, 256  ;;  %p1443_p1 = scmp.lt.s32.totalorder %s1252_s17, %s1252_s17 }
   0xb   :  { %1330 = vmatpush3.msk.msra.mxu0 %vm133_vm1, %v120_v6  ;;  %1335 = vmatpush3.msk.msra.mxu1 %vm133_vm1, %v121_v5  ;;  %p1439_p0 = scmp.ne.s32.totalorder %s1252_s17, %s1438_s2  ;;  %p1444_p2 = scmp.lt.s32.totalorder %s1438_s2, %s1438_s2 }
   0xc   :  { %1332 = vmatmul.mubr.msk.f32.vlgmr.msra.gmra.mrb[0].mxu0 %vm129_vm2, %v112_v7  ;;  %1337 = vmatmul.mubr.msk.f32.vlgmr.msra.gmra.mrb[0].mxu1 %vm129_vm2, %v112_v7 }
   0xd   :  { %1339 = vmatprep.subr.mxu0 %v1462_v4  ;;  %1344 = vmatprep.subr.mxu1 %v1462_v4  ;;  %p1445_p3 = por %p1444_p2, %p1443_p1 }
   0xe   :  { %367 = vrot.lane.b32.xlu1 %v123_v8, %s1464_s23  ;;  %285 = vrot.lane.b32.xlu0 %v122_v9, %s1464_s23 }
   0xf   :  { %1341 = vmatprep.mubr.msk.f32.mxu0 %vm1463_vm0, %v1462_v4  ;;  %1346 = vmatprep.mubr.msk.f32.mxu1 %vm1463_vm0, %v1462_v4  ;;  %p1446_p4 = pnand %p1445_p3, %p1439_p0 }
  0x12   :  { %446 = vrot.lane.b32.xlu1 %v122_v9, %s1465_s24  ;;  %444 = vrot.lane.b32.xlu0 %v120_v6, %s1465_s24 }
  0x16   :  { %527 = vrot.lane.b32.xlu1 %v123_v8, %s1465_s24  ;;  %525 = vrot.lane.b32.xlu0 %v121_v5, %s1465_s24 }
  0x1a   :  { %606 = vrot.lane.b32.xlu1 %v122_v9, %s1466_s25  ;;  %604 = vrot.lane.b32.xlu0 %v120_v6, %s1466_s25 }
  0x1e   :  { %687 = vrot.lane.b32.xlu1 %v123_v8, %s1466_s25  ;;  %685 = vrot.lane.b32.xlu0 %v121_v5, %s1466_s25 }
  0x22   :  { %766 = vrot.lane.b32.xlu1 %v122_v9, %s1467_s26  ;;  %764 = vrot.lane.b32.xlu0 %v120_v6, %s1467_s26 }
  0x26   :  { %847 = vrot.lane.b32.xlu1 %v123_v8, %s1467_s26  ;;  %845 = vrot.lane.b32.xlu0 %v121_v5, %s1467_s26 }
  0x2a   :  { %926 = vrot.lane.b32.xlu1 %v122_v9, %s1468_s27  ;;  %924 = vrot.lane.b32.xlu0 %v120_v6, %s1468_s27 }
  0x2e   :  { %1007 = vrot.lane.b32.xlu1 %v123_v8, %s1468_s27  ;;  %1005 = vrot.lane.b32.xlu0 %v121_v5, %s1468_s27 }
  0x32   :  { %1086 = vrot.lane.b32.xlu1 %v122_v9, %s1470_s28  ;;  %1084 = vrot.lane.b32.xlu0 %v120_v6, %s1470_s28 }
  0x36   :  { %1167 = vrot.lane.b32.xlu1 %v123_v8, %s1470_s28  ;;  %1165 = vrot.lane.b32.xlu0 %v121_v5, %s1470_s28 }
  0x3a   :  { %126 = vperm.xlu0 %1437, %v119_v11  }
  0x7c   :  { %v366_v12 = vpop.permute.xlu1 %365  ;;  %v284_v13 = vpop.permute.xlu0 %283 }
  0x80   :  { %v368_v14 = vpop.permute.xlu1 %367  ;;  %v286_v15 = vpop.permute.xlu0 %285 }
  0x81   :  { %v369_v17 = vsel %vm287_vm3, %v366_v12, %v368_v14  ;;  %v288_v18 = vsel %vm287_vm3, %v284_v13, %v286_v15 }
  0x82   :  { %1340 = vmatpush3.msk.msra.mxu0 %vm133_vm1, %v288_v18  ;;  %1345 = vmatpush3.msk.msra.mxu1 %vm133_vm1, %v369_v17 }
  0x83   :  { %1342 = vmatmul.mubr.msk.f32.vlgmr.msra.gmra.mrb[0].mxu0 %vm129_vm2, %v113_v16  ;;  %1347 = vmatmul.mubr.msk.f32.vlgmr.msra.gmra.mrb[0].mxu1 %vm129_vm2, %v113_v16 }
  0x84   :  { %v447_v19 = vpop.permute.xlu1 %446  ;;  %v445_v20 = vpop.permute.xlu0 %444  ;;  %1349 = vmatprep.subr.mxu0 %v1462_v4  ;;  %1354 = vmatprep.subr.mxu1 %v1462_v4 }
  0x85   :  { %v449_v21 = vsel %vm448_vm4, %v445_v20, %v447_v19  ;;  %1351 = vmatprep.mubr.msk.f32.mxu0 %vm1463_vm0, %v1462_v4  ;;  %1356 = vmatprep.mubr.msk.f32.mxu1 %vm1463_vm0, %v1462_v4 }
  0x86   :  { %1350 = vmatpush3.msk.msra.mxu0 %vm133_vm1, %v449_v21 }
  0x87   :  { %1359 = vmatprep.subr.mxu0 %v1462_v4 }
  0x88   :  { %v528_v22 = vpop.permute.xlu1 %527  ;;  %v526_v23 = vpop.permute.xlu0 %525 }
  0x89   :  { %v529_v25 = vsel %vm448_vm4, %v526_v23, %v528_v22 }
  0x8a   :  { %1355 = vmatpush3.msk.msra.mxu1 %vm133_vm1, %v529_v25 }
  0x8b   :  { %1352 = vmatmul.mubr.msk.f32.vlgmr.msra.gmra.mrb[0].mxu0 %vm129_vm2, %v114_v24  ;;  %1357 = vmatmul.mubr.msk.f32.vlgmr.msra.gmra.mrb[0].mxu1 %vm129_vm2, %v114_v24 }
  0x8c   :  { %v607_v26 = vpop.permute.xlu1 %606  ;;  %v605_v27 = vpop.permute.xlu0 %604  ;;  %1364 = vmatprep.subr.mxu1 %v1462_v4  ;;  %1361 = vmatprep.mubr.msk.f32.mxu0 %vm1463_vm0, %v1462_v4 }
  0x8d   :  { %v609_v28 = vsel %vm608_vm5, %v605_v27, %v607_v26  ;;  %1366 = vmatprep.mubr.msk.f32.mxu1 %vm1463_vm0, %v1462_v4 }
  0x8e   :  { %1360 = vmatpush3.msk.msra.mxu0 %vm133_vm1, %v609_v28 }
  0x8f   :  { %1369 = vmatprep.subr.mxu0 %v1462_v4 }
  0x90   :  { %v688_v29 = vpop.permute.xlu1 %687  ;;  %v686_v30 = vpop.permute.xlu0 %685 }
  0x91   :  { %v689_v32 = vsel %vm608_vm5, %v686_v30, %v688_v29 }
  0x92   :  { %1365 = vmatpush3.msk.msra.mxu1 %vm133_vm1, %v689_v32 }
  0x93   :  { %1362 = vmatmul.mubr.msk.f32.vlgmr.msra.gmra.mrb[0].mxu0 %vm129_vm2, %v115_v31  ;;  %1367 = vmatmul.mubr.msk.f32.vlgmr.msra.gmra.mrb[0].mxu1 %vm129_vm2, %v115_v31 }
  0x94   :  { %v767_v33 = vpop.permute.xlu1 %766  ;;  %v765_v34 = vpop.permute.xlu0 %764  ;;  %1374 = vmatprep.subr.mxu1 %v1462_v4  ;;  %1371 = vmatprep.mubr.msk.f32.mxu0 %vm1463_vm0, %v1462_v4 }
  0x95   :  { %v769_v35 = vsel %vm768_vm6, %v765_v34, %v767_v33  ;;  %1376 = vmatprep.mubr.msk.f32.mxu1 %vm1463_vm0, %v1462_v4 }
  0x96   :  { %1370 = vmatpush3.msk.msra.mxu0 %vm133_vm1, %v769_v35 }
  0x97   :  { %1379 = vmatprep.subr.mxu0 %v1462_v4 }
  0x98   :  { %v848_v36 = vpop.permute.xlu1 %847  ;;  %v846_v37 = vpop.permute.xlu0 %845 }
  0x99   :  { %v849_v39 = vsel %vm768_vm6, %v846_v37, %v848_v36 }
  0x9a   :  { %1375 = vmatpush3.msk.msra.mxu1 %vm133_vm1, %v849_v39 }
  0x9b   :  { %1372 = vmatmul.mubr.msk.f32.vlgmr.msra.gmra.mrb[0].mxu0 %vm129_vm2, %v116_v38  ;;  %1377 = vmatmul.mubr.msk.f32.vlgmr.msra.gmra.mrb[0].mxu1 %vm129_vm2, %v116_v38 }
  0x9c   :  { %v927_v40 = vpop.permute.xlu1 %926  ;;  %v925_v41 = vpop.permute.xlu0 %924  ;;  %1384 = vmatprep.subr.mxu1 %v1462_v4  ;;  %1381 = vmatprep.mubr.msk.f32.mxu0 %vm1463_vm0, %v1462_v4 }
  0x9d   :  { %v929_v42 = vsel %vm928_vm7, %v925_v41, %v927_v40  ;;  %1386 = vmatprep.mubr.msk.f32.mxu1 %vm1463_vm0, %v1462_v4 }
  0x9e   :  { %1380 = vmatpush3.msk.msra.mxu0 %vm133_vm1, %v929_v42 }
  0x9f   :  { %1389 = vmatprep.subr.mxu0 %v1462_v4 }
  0xa0   :  { %v1008_v43 = vpop.permute.xlu1 %1007  ;;  %v1006_v44 = vpop.permute.xlu0 %1005 }
  0xa1   :  { %v1009_v46 = vsel %vm928_vm7, %v1006_v44, %v1008_v43 }
  0xa2   :  { %1385 = vmatpush3.msk.msra.mxu1 %vm133_vm1, %v1009_v46 }
  0xa3   :  { %1382 = vmatmul.mubr.msk.f32.vlgmr.msra.gmra.mrb[0].mxu0 %vm129_vm2, %v117_v45  ;;  %1387 = vmatmul.mubr.msk.f32.vlgmr.msra.gmra.mrb[0].mxu1 %vm129_vm2, %v117_v45 }
  0xa4   :  { %v1087_v47 = vpop.permute.xlu1 %1086  ;;  %v1085_v48 = vpop.permute.xlu0 %1084  ;;  %1394 = vmatprep.subr.mxu1 %v1462_v4  ;;  %1391 = vmatprep.mubr.msk.f32.mxu0 %vm1463_vm0, %v1462_v4 }
  0xa5   :  { %v1089_v49 = vsel %vm1088_vm8, %v1085_v48, %v1087_v47  ;;  %1396 = vmatprep.mubr.msk.f32.mxu1 %vm1463_vm0, %v1462_v4 }
  0xa6   :  { %1390 = vmatpush3.msk.msra.mxu0 %vm133_vm1, %v1089_v49 }
  0xa8   :  { %v1168_v50 = vpop.permute.xlu1 %1167  ;;  %v1166_v51 = vpop.permute.xlu0 %1165 }
  0xa9   :  { %v1169_v53 = vsel %vm1088_vm8, %v1166_v51, %v1168_v50 }
  0xaa   :  { %1395 = vmatpush3.msk.msra.mxu1 %vm133_vm1, %v1169_v53 }
  0xab   :  { %1392 = vmatmul.mubr.msk.f32.vlgmr.msra.gmra.mrb[0].mxu0 %vm129_vm2, %v118_v52  ;;  %1397 = vmatmul.mubr.msk.f32.vlgmr.msra.gmra.mrb[0].mxu1 %vm129_vm2, %v118_v52 }
  0xb9   :  { %v127_v54 = vpop.permute.xlu0 %126 }
 0x17e   :  { %v1238_v55 = vpop.f32.mrb[0].mxu1  ;;  %v1161_v56 = vpop.f32.mrb[0].mxu0 }
 0x17f   :  { %v1400_v57 = vadd.f32 %v1238_v55, %v127_v54  ;;  %v1399_v58 = vadd.f32 %v1161_v56, %v127_v54  ;;  %v1393_v59 = vpop.f32.mrb[1].mxu0  ;;  %v1398_v60 = vpop.f32.mrb[1].mxu1 }
 0x181   :  { %1245 = vst [vmem:[#allocation4 + $0x8] sm:$0xff] %v1400_v57  ;;  %1244 = vst [vmem:[#allocation4] sm:$0xff] %v1399_v58 }
 0x182   :  { %1449 = shalt.err (!%p1446_p4)
}
 0x183   :  { %s1450_s20 = scalar_lea.hbm %s1621_s4, 256 }
 0x184   :  { %p1451_p5 = scmp.ne.s32.totalorder %s1621_s4, %s1450_s20  ;;  %p1454_p6 = scmp.lt.u32.totalorder %s1450_s20, %s1621_s4 }
 0x186   :  { %p1456_p7 = pnand %p1454_p6, %p1451_p5 }
 0x188   :  { %1459 = shalt.err (!%p1456_p7)
}
 0x189   :  { %s1472_s23 = smov 128   ;;  %s1473_s24 = smov 8  }
 0x18a   :  { %1257 = dma.vmem_to_hbm [thread:$0]  %s1252_s17, 256, %s1621_s4, [#allocation5], %s1472_s23, %s1472_s23, %s1473_s24  }
 0x18b   :  { %1460 = dma.done.wait [#allocation5], 256  }
 0x18c   :  { %1461 = vsyncadd [#allocation5], 4294967040 }
 0x18d   :  { %1261 = vsyncpa [#allocation5], 1 }

</bundles_post_ra>
